<compile_context>
chip_gen: v5e
topology: v5e:2x2
jax: 0.10.0
libtpu: 0.0.40
codegen_flags: <defaults>
</compile_context>

<pallas_src>
import jax
import jax.numpy as jnp
from jax.experimental import pallas as pl
from jax.experimental.pallas import tpu as pltpu


def _round_up(n, m):
    return ((n + m - 1) // m) * m


def policy_net_kernel(x_ref, w1_ref, b1_ref, w2_ref, b2_ref, o_ref):
    """fc1 -> leaky_relu(0.01) -> fc2 -> log_softmax(axis=-1) on one batch tile."""
    # Cast to the matmul dtype inside the kernel (no wrapper-side pass over x).
    x = x_ref[...].astype(w1_ref.dtype)
    # fc1 on the MXU with f32 accumulation, bias add in f32 on the VPU.
    h = jnp.dot(x, w1_ref[...], preferred_element_type=jnp.float32) + b1_ref[...]
    # leaky_relu, negative_slope=0.01 (slope < 1 => max(h, 0.01*h) is exact).
    h = jnp.maximum(h, 0.01 * h)
    # Cast once (halves live-tile / spill traffic) before the fc2 MXU push.
    h = h.astype(w2_ref.dtype)
    logits = jnp.dot(h, w2_ref[...], preferred_element_type=jnp.float32) + b2_ref[...]
    # Output columns are unpadded, so no masking is needed before the reduction.
    m = jnp.max(logits, axis=-1, keepdims=True)
    z = logits - m
    lse = jnp.log(jnp.sum(jnp.exp(z), axis=-1, keepdims=True))
    o_ref[...] = (z - lse).astype(o_ref.dtype)


def _scoped_vmem_limit():
    cap = None
    try:
        cap = getattr(pltpu.get_tpu_info(), "vmem_capacity_bytes", None)
    except Exception:
        cap = None
    if cap is None:
        cap = 64 * 1024 * 1024  # assume the smallest (v7x per-TC VMEM)
    # v5e/v6e (128 MiB physical) -> 64 MiB scoped; v7x (64 MiB physical) -> 32 MiB.
    return 64 * 1024 * 1024 if cap >= 128 * 1024 * 1024 else 32 * 1024 * 1024


def _step_vmem_bytes(tm, in_size, hid_p, out_size, x_itemsize, mm_itemsize):
    # Double-buffered activation blocks (x in its true dtype, f32 output).
    dbuf = 2 * tm * (in_size * x_itemsize + out_size * 4)
    # Weights/biases; counted x2 in case single-buffering is not honored.
    weights = 2 * ((in_size * hid_p + hid_p * out_size) * mm_itemsize
                   + (hid_p + out_size) * 4)
    # Live intermediates: h in f32 + bf16, plus a few out_size-wide f32 temporaries.
    live = tm * (hid_p * (4 + mm_itemsize) + 4 * out_size * 4)
    return dbuf + weights + live


def policy_net_v2(x, w1, b1, w2, b2, *, block_rows=1024, matmul_dtype=jnp.bfloat16):
    """x: [B, in], w1: [in, hid], b1: [hid]/[1,hid], w2: [hid, out], b2: [out]/[1,out]."""
    B, in_size = x.shape
    hid_size = w1.shape[1]
    out_size = w2.shape[1]
    mm_itemsize = jnp.dtype(matmul_dtype).itemsize
    x_itemsize = jnp.dtype(x.dtype).itemsize

    # Only the hidden dim is padded (weight-side, one-time, VMEM-resident). Zero padding
    # is exact: padded h columns are 0 and multiply zero W2 rows.
    hid_p = _round_up(hid_size, 128)

    w1_c = w1.astype(matmul_dtype)
    w2_c = w2.astype(matmul_dtype)
    b1_c = jnp.asarray(b1, jnp.float32).reshape(1, hid_size)
    b2_c = jnp.asarray(b2, jnp.float32).reshape(1, out_size)
    if hid_p != hid_size:
        w1_c = jnp.zeros((in_size, hid_p), matmul_dtype).at[:, :hid_size].set(w1_c)
        b1_c = jnp.zeros((1, hid_p), jnp.float32).at[:, :hid_size].set(b1_c)
        w2_c = jnp.zeros((hid_p, out_size), matmul_dtype).at[:hid_size, :].set(w2_c)

    vmem_limit = _scoped_vmem_limit()
    weight_bytes = 2 * ((in_size * hid_p + hid_p * out_size) * mm_itemsize
                        + (hid_p + out_size) * 4)
    if weight_bytes > vmem_limit // 2:
        # TODO(synk): tile hid/out with an extra "arbitrary" grid axis + pl.when
        # accumulator (or fp8 weights on v7x) when fc weights exceed the VMEM budget.
        raise NotImplementedError("fc weights exceed the VMEM budget; weight tiling "
                                  "is not implemented for these shapes")

    # Pad the batch only to a multiple of 8 (never to a multiple of tm); for B < 8 the
    # block simply equals the full batch dim (legal), so no padding at all.
    if B % 8 == 0 or B < 8:
        b_p, x_in = B, x
    else:
        b_p = _round_up(B, 8)
        x_in = jnp.zeros((b_p, in_size), x.dtype).at[:B].set(x)

    if b_p < 8:
        tm = b_p
    else:
        # Cap tm so the grid has >= 2 steps when possible (feeds both v7x TensorCores
        # under dimension_semantics=("parallel",); costs one ~0.35us step elsewhere).
        tm_cap = min(block_rows, _round_up(pl.cdiv(b_p, 2), 8)) if b_p >= 16 else b_p
        budget = int(0.75 * vmem_limit)
        tm, t = 8, 8
        while t <= min(tm_cap, b_p):
            if b_p % t == 0 and _step_vmem_bytes(
                    t, in_size, hid_p, out_size, x_itemsize, mm_itemsize) <= budget:
                tm = t
            t += 8
    grid = (pl.cdiv(b_p, tm),)

    cost = pl.CostEstimate(
        flops=int(2 * b_p * (in_size * hid_p + hid_p * out_size)),
        transcendentals=int(b_p * out_size),
        bytes_accessed=int(b_p * in_size * x_itemsize
                           + (in_size * hid_p + hid_p * out_size) * mm_itemsize
                           + (hid_p + out_size) * 4
                           + b_p * out_size * 4),
    )

    def make_call(single_buffer_weights):
        resident = ({"pipeline_mode": pl.Buffered(1)} if single_buffer_weights else {})
        return pl.pallas_call(
            policy_net_kernel,
            out_shape=jax.ShapeDtypeStruct((b_p, out_size), jnp.float32),
            grid=grid,
            in_specs=[
                pl.BlockSpec((tm, in_size), lambda i: (i, 0)),                   # x: batch-tiled
                pl.BlockSpec((in_size, hid_p), lambda i: (0, 0), **resident),    # W1: resident
                pl.BlockSpec((1, hid_p), lambda i: (0, 0), **resident),          # b1: resident
                pl.BlockSpec((hid_p, out_size), lambda i: (0, 0), **resident),   # W2: resident
                pl.BlockSpec((1, out_size), lambda i: (0, 0), **resident),       # b2: resident
            ],
            out_specs=pl.BlockSpec((tm, out_size), lambda i: (i, 0)),            # true out width
            compiler_params=pltpu.CompilerParams(
                dimension_semantics=("parallel",),
                vmem_limit_bytes=vmem_limit,
            ),
            cost_estimate=cost,
        )

    args = (x_in, w1_c, b1_c, w2_c, b2_c)
    try:
        out = make_call(True)(*args)    # single-buffer the constant weight/bias blocks
    except Exception:
        out = make_call(False)(*args)   # fall back to default (double-buffered) blocks

    return out if b_p == B else out[:B]


def init_params(key, input_size, hidden_size, output_size):
    k1, k2, k3, k4 = jax.random.split(key, 4)
    # Kaiming-uniform-ish deterministic init (exact PyTorch init not required).
    bound1 = 1.0 / jnp.sqrt(input_size)
    bound2 = 1.0 / jnp.sqrt(hidden_size)
    w1 = jax.random.uniform(k1, (input_size, hidden_size), jnp.float32, -bound1, bound1)
    b1 = jax.random.uniform(k2, (1, hidden_size), jnp.float32, -bound1, bound1)
    w2 = jax.random.uniform(k3, (hidden_size, output_size), jnp.float32, -bound2, bound2)
    b2 = jax.random.uniform(k4, (1, output_size), jnp.float32, -bound2, bound2)
    return w1, b1, w2, b2


if __name__ == "__main__":
    key = jax.random.PRNGKey(0)
    batch, input_size, hidden_size, output_size = 4, 16, 50, 8  # hidden=50 = module default

    kx, kp = jax.random.split(key)
    x = jax.random.normal(kx, (batch, input_size), jnp.float32)
    w1, b1, w2, b2 = init_params(kp, input_size, hidden_size, output_size)

    out = policy_net_v2(x, w1, b1, w2, b2)
    out = jax.block_until_ready(out)
    assert out.shape == (batch, output_size)

    # Tight check vs a JAX reference using the same bf16 matmul inputs / f32 accumulation.
    xb, w1b, w2b = (a.astype(jnp.bfloat16) for a in (x, w1, w2))
    h = jnp.dot(xb, w1b, preferred_element_type=jnp.float32) + b1
    h = jnp.maximum(h, 0.01 * h)
    logits = jnp.dot(h.astype(jnp.bfloat16), w2b, preferred_element_type=jnp.float32) + b2
    ref_bf16 = jax.nn.log_softmax(logits, axis=-1)
    assert jnp.allclose(out, ref_bf16, atol=5e-3, rtol=5e-3), "mismatch vs bf16-matmul reference"

    # Loose check vs the full-f32 (PyTorch-semantics) reference.
    h32 = x @ w1 + b1
    h32 = jnp.where(h32 > 0, h32, 0.01 * h32)
    ref_f32 = jax.nn.log_softmax(h32 @ w2 + b2, axis=-1)
    assert jnp.allclose(out, ref_f32, atol=1e-1), "mismatch vs f32 reference"

    print("KERNEL_OK")
</pallas_src>

<mosaic_0001>
module attributes {stable_mosaic.version = 11 : i64} {
  func.func @policy_net_kernel(%arg0: i32, %arg1: memref<4x16xf32, #tpu.memory_space<vmem>>, %arg2: memref<16x128xbf16, #tpu.memory_space<vmem>>, %arg3: memref<1x128xf32, #tpu.memory_space<vmem>>, %arg4: memref<128x8xbf16, #tpu.memory_space<vmem>>, %arg5: memref<1x8xf32, #tpu.memory_space<vmem>>, %arg6: memref<4x8xf32, #tpu.memory_space<vmem>>) attributes {dimension_semantics = [#tpu.dimension_semantics<parallel>], iteration_bounds = array<i64: 1>, scalar_prefetch = 0 : i64, scratch_operands = 0 : i64, tpu.core_type = #tpu.core_type<tc>, window_params = [{transform_indices = @transform_0, window_bounds = array<i64: 4, 16>}, {pipeline_mode = #tpu.pipeline_mode<synchronous>, transform_indices = @transform_1, window_bounds = array<i64: 16, 128>}, {pipeline_mode = #tpu.pipeline_mode<synchronous>, transform_indices = @transform_2, window_bounds = array<i64: 1, 128>}, {pipeline_mode = #tpu.pipeline_mode<synchronous>, transform_indices = @transform_3, window_bounds = array<i64: 128, 8>}, {pipeline_mode = #tpu.pipeline_mode<synchronous>, transform_indices = @transform_4, window_bounds = array<i64: 1, 8>}, {transform_indices = @transform_5, window_bounds = array<i64: 4, 8>}]} {
    %c0 = arith.constant 0 : index
    %c0_0 = arith.constant 0 : index
    %0 = vector.load %arg1[%c0, %c0_0] : memref<4x16xf32, #tpu.memory_space<vmem>>, vector<4x16xf32>
    %1 = arith.truncf %0 : vector<4x16xf32> to vector<4x16xbf16>
    %c0_1 = arith.constant 0 : index
    %c0_2 = arith.constant 0 : index
    %2 = vector.load %arg2[%c0_1, %c0_2] : memref<16x128xbf16, #tpu.memory_space<vmem>>, vector<16x128xbf16>
    %cst = arith.constant dense<0.000000e+00> : vector<4x128xf32>
    %3 = tpu.matmul %1, %2, %cst {dimension_numbers = #tpu.dot_dimension_numbers<[1], [0], [0], [1], [0, 0, 1, 1], [], []>} : vector<4x16xbf16>, vector<16x128xbf16>, vector<4x128xf32> -> vector<4x128xf32>
    %c0_3 = arith.constant 0 : index
    %c0_4 = arith.constant 0 : index
    %4 = vector.load %arg3[%c0_3, %c0_4] : memref<1x128xf32, #tpu.memory_space<vmem>>, vector<1x128xf32>
    %5 = vector.broadcast %4 : vector<1x128xf32> to vector<4x128xf32>
    %6 = arith.addf %3, %5 : vector<4x128xf32>
    %cst_5 = arith.constant 0.00999999977 : f32
    %7 = vector.broadcast %cst_5 : f32 to vector<4x128xf32>
    %8 = arith.mulf %7, %6 : vector<4x128xf32>
    %9 = arith.maximumf %6, %8 : vector<4x128xf32>
    %10 = arith.truncf %9 : vector<4x128xf32> to vector<4x128xbf16>
    %c0_6 = arith.constant 0 : index
    %c0_7 = arith.constant 0 : index
    %11 = vector.load %arg4[%c0_6, %c0_7] : memref<128x8xbf16, #tpu.memory_space<vmem>>, vector<128x8xbf16>
    %cst_8 = arith.constant dense<0.000000e+00> : vector<4x8xf32>
    %12 = tpu.matmul %10, %11, %cst_8 {dimension_numbers = #tpu.dot_dimension_numbers<[1], [0], [0], [1], [0, 0, 1, 1], [], []>} : vector<4x128xbf16>, vector<128x8xbf16>, vector<4x8xf32> -> vector<4x8xf32>
    %c0_9 = arith.constant 0 : index
    %c0_10 = arith.constant 0 : index
    %13 = vector.load %arg5[%c0_9, %c0_10] : memref<1x8xf32, #tpu.memory_space<vmem>>, vector<1x8xf32>
    %14 = vector.broadcast %13 : vector<1x8xf32> to vector<4x8xf32>
    %15 = arith.addf %12, %14 : vector<4x8xf32>
    %cst_11 = arith.constant dense<0xFF800000> : vector<4xf32>
    %16 = vector.multi_reduction <maximumf>, %15, %cst_11 [1] : vector<4x8xf32> to vector<4xf32>
    %17 = vector.shape_cast %16 : vector<4xf32> to vector<4x1xf32>
    %18 = vector.broadcast %17 : vector<4x1xf32> to vector<4x8xf32>
    %19 = arith.subf %15, %18 : vector<4x8xf32>
    %20 = math.exp %19 : vector<4x8xf32>
    %cst_12 = arith.constant dense<0.000000e+00> : vector<4xf32>
    %21 = vector.multi_reduction <add>, %20, %cst_12 [1] : vector<4x8xf32> to vector<4xf32>
    %22 = vector.shape_cast %21 : vector<4xf32> to vector<4x1xf32>
    %23 = math.log %22 : vector<4x1xf32>
    %24 = vector.broadcast %23 : vector<4x1xf32> to vector<4x8xf32>
    %25 = arith.subf %19, %24 : vector<4x8xf32>
    %c0_13 = arith.constant 0 : index
    %c0_14 = arith.constant 0 : index
    %26 = vector.load %arg6[%c0_13, %c0_14] : memref<4x8xf32, #tpu.memory_space<vmem>>, vector<4x8xf32>
    tpu.vector_store %arg6[%c0_13, %c0_14], %25 {strides = array<i32>} : memref<4x8xf32, #tpu.memory_space<vmem>>, vector<4x8xf32>,
    return
  }
  func.func @transform_0(%arg0: i32) -> (i32, i32) {
    %c0_i32 = arith.constant 0 : i32
    %c0_i32_0 = arith.constant 0 : i32
    return %arg0, %c0_i32 : i32, i32
  }
  func.func @transform_1(%arg0: i32) -> (i32, i32) {
    %c0_i32 = arith.constant 0 : i32
    %c0_i32_0 = arith.constant 0 : i32
    %c0_i32_1 = arith.constant 0 : i32
    return %c0_i32, %c0_i32_0 : i32, i32
  }
  func.func @transform_2(%arg0: i32) -> (i32, i32) {
    %c0_i32 = arith.constant 0 : i32
    %c0_i32_0 = arith.constant 0 : i32
    %c0_i32_1 = arith.constant 0 : i32
    return %c0_i32, %c0_i32_0 : i32, i32
  }
  func.func @transform_3(%arg0: i32) -> (i32, i32) {
    %c0_i32 = arith.constant 0 : i32
    %c0_i32_0 = arith.constant 0 : i32
    %c0_i32_1 = arith.constant 0 : i32
    return %c0_i32, %c0_i32_0 : i32, i32
  }
  func.func @transform_4(%arg0: i32) -> (i32, i32) {
    %c0_i32 = arith.constant 0 : i32
    %c0_i32_0 = arith.constant 0 : i32
    %c0_i32_1 = arith.constant 0 : i32
    return %c0_i32, %c0_i32_0 : i32, i32
  }
  func.func @transform_5(%arg0: i32) -> (i32, i32) {
    %c0_i32 = arith.constant 0 : i32
    %c0_i32_0 = arith.constant 0 : i32
    return %arg0, %c0_i32 : i32, i32
  }
}

module attributes {stable_mosaic.version = 11 : i64} {
  func.func @policy_net_kernel(%arg0: i32, %arg1: memref<4x16xf32, #tpu.memory_space<vmem>>, %arg2: memref<16x128xbf16, #tpu.memory_space<vmem>>, %arg3: memref<1x128xf32, #tpu.memory_space<vmem>>, %arg4: memref<128x8xbf16, #tpu.memory_space<vmem>>, %arg5: memref<1x8xf32, #tpu.memory_space<vmem>>, %arg6: memref<4x8xf32, #tpu.memory_space<vmem>>) attributes {dimension_semantics = [#tpu.dimension_semantics<parallel>], iteration_bounds = array<i64: 1>, scalar_prefetch = 0 : i64, scratch_operands = 0 : i64, tpu.core_type = #tpu.core_type<tc>, window_params = [{transform_indices = @transform_0, window_bounds = array<i64: 4, 16>}, {pipeline_mode = #tpu.pipeline_mode<synchronous>, transform_indices = @transform_1, window_bounds = array<i64: 16, 128>}, {pipeline_mode = #tpu.pipeline_mode<synchronous>, transform_indices = @transform_2, window_bounds = array<i64: 1, 128>}, {pipeline_mode = #tpu.pipeline_mode<synchronous>, transform_indices = @transform_3, window_bounds = array<i64: 128, 8>}, {pipeline_mode = #tpu.pipeline_mode<synchronous>, transform_indices = @transform_4, window_bounds = array<i64: 1, 8>}, {transform_indices = @transform_5, window_bounds = array<i64: 4, 8>}]} {
    %c0 = arith.constant 0 : index
    %c0_0 = arith.constant 0 : index
    %0 = vector.load %arg1[%c0, %c0_0] : memref<4x16xf32, #tpu.memory_space<vmem>>, vector<4x16xf32>
    %1 = arith.truncf %0 : vector<4x16xf32> to vector<4x16xbf16>
    %c0_1 = arith.constant 0 : index
    %c0_2 = arith.constant 0 : index
    %2 = vector.load %arg2[%c0_1, %c0_2] : memref<16x128xbf16, #tpu.memory_space<vmem>>, vector<16x128xbf16>
    %cst = arith.constant dense<0.000000e+00> : vector<4x128xf32>
    %3 = tpu.matmul %1, %2, %cst {dimension_numbers = #tpu.dot_dimension_numbers<[1], [0], [0], [1], [0, 0, 1, 1], [], []>} : vector<4x16xbf16>, vector<16x128xbf16>, vector<4x128xf32> -> vector<4x128xf32>
    %c0_3 = arith.constant 0 : index
    %c0_4 = arith.constant 0 : index
    %4 = vector.load %arg3[%c0_3, %c0_4] : memref<1x128xf32, #tpu.memory_space<vmem>>, vector<1x128xf32>
    %5 = vector.broadcast %4 : vector<1x128xf32> to vector<4x128xf32>
    %6 = arith.addf %3, %5 : vector<4x128xf32>
    %cst_5 = arith.constant 0.00999999977 : f32
    %7 = vector.broadcast %cst_5 : f32 to vector<4x128xf32>
    %8 = arith.mulf %7, %6 : vector<4x128xf32>
    %9 = arith.maximumf %6, %8 : vector<4x128xf32>
    %10 = arith.truncf %9 : vector<4x128xf32> to vector<4x128xbf16>
    %c0_6 = arith.constant 0 : index
    %c0_7 = arith.constant 0 : index
    %11 = vector.load %arg4[%c0_6, %c0_7] : memref<128x8xbf16, #tpu.memory_space<vmem>>, vector<128x8xbf16>
    %cst_8 = arith.constant dense<0.000000e+00> : vector<4x8xf32>
    %12 = tpu.matmul %10, %11, %cst_8 {dimension_numbers = #tpu.dot_dimension_numbers<[1], [0], [0], [1], [0, 0, 1, 1], [], []>} : vector<4x128xbf16>, vector<128x8xbf16>, vector<4x8xf32> -> vector<4x8xf32>
    %c0_9 = arith.constant 0 : index
    %c0_10 = arith.constant 0 : index
    %13 = vector.load %arg5[%c0_9, %c0_10] : memref<1x8xf32, #tpu.memory_space<vmem>>, vector<1x8xf32>
    %14 = vector.broadcast %13 : vector<1x8xf32> to vector<4x8xf32>
    %15 = arith.addf %12, %14 : vector<4x8xf32>
    %cst_11 = arith.constant dense<0xFF800000> : vector<4xf32>
    %16 = vector.multi_reduction <maximumf>, %15, %cst_11 [1] : vector<4x8xf32> to vector<4xf32>
    %17 = vector.shape_cast %16 : vector<4xf32> to vector<4x1xf32>
    %18 = vector.broadcast %17 : vector<4x1xf32> to vector<4x8xf32>
    %19 = arith.subf %15, %18 : vector<4x8xf32>
    %20 = math.exp %19 : vector<4x8xf32>
    %cst_12 = arith.constant dense<0.000000e+00> : vector<4xf32>
    %21 = vector.multi_reduction <add>, %20, %cst_12 [1] : vector<4x8xf32> to vector<4xf32>
    %22 = vector.shape_cast %21 : vector<4xf32> to vector<4x1xf32>
    %23 = math.log %22 : vector<4x1xf32>
    %24 = vector.broadcast %23 : vector<4x1xf32> to vector<4x8xf32>
    %25 = arith.subf %19, %24 : vector<4x8xf32>
    %c0_13 = arith.constant 0 : index
    %c0_14 = arith.constant 0 : index
    %26 = vector.load %arg6[%c0_13, %c0_14] : memref<4x8xf32, #tpu.memory_space<vmem>>, vector<4x8xf32>
    tpu.vector_store %arg6[%c0_13, %c0_14], %25 {strides = array<i32>} : memref<4x8xf32, #tpu.memory_space<vmem>>, vector<4x8xf32>,
    return
  }
  func.func @transform_0(%arg0: i32) -> (i32, i32) {
    %c0_i32 = arith.constant 0 : i32
    %c0_i32_0 = arith.constant 0 : i32
    return %arg0, %c0_i32 : i32, i32
  }
  func.func @transform_1(%arg0: i32) -> (i32, i32) {
    %c0_i32 = arith.constant 0 : i32
    %c0_i32_0 = arith.constant 0 : i32
    %c0_i32_1 = arith.constant 0 : i32
    return %c0_i32, %c0_i32_0 : i32, i32
  }
  func.func @transform_2(%arg0: i32) -> (i32, i32) {
    %c0_i32 = arith.constant 0 : i32
    %c0_i32_0 = arith.constant 0 : i32
    %c0_i32_1 = arith.constant 0 : i32
    return %c0_i32, %c0_i32_0 : i32, i32
  }
  func.func @transform_3(%arg0: i32) -> (i32, i32) {
    %c0_i32 = arith.constant 0 : i32
    %c0_i32_0 = arith.constant 0 : i32
    %c0_i32_1 = arith.constant 0 : i32
    return %c0_i32, %c0_i32_0 : i32, i32
  }
  func.func @transform_4(%arg0: i32) -> (i32, i32) {
    %c0_i32 = arith.constant 0 : i32
    %c0_i32_0 = arith.constant 0 : i32
    %c0_i32_1 = arith.constant 0 : i32
    return %c0_i32, %c0_i32_0 : i32, i32
  }
  func.func @transform_5(%arg0: i32) -> (i32, i32) {
    %c0_i32 = arith.constant 0 : i32
    %c0_i32_0 = arith.constant 0 : i32
    return %arg0, %c0_i32 : i32, i32
  }
}

</mosaic_0001>

<bundles_post_ra>
// kernel: tpu_custom_call.1
= control target key start
LH: loop header
LB: loop body
LE: loop exit
PB: predicated region body
PF: predicated region fallthrough
CT: control target
= control target key end

     0   :  { %vm36_vm0 = vcmask 130048   ;;  %s319_s0 = inlined_call_operand.vmem [shape: f32[4,16], index: 0, kind: input, shape index: {}]   ;;  %s320_s1 = inlined_call_operand.vmem [shape: bf16[16,128], index: 1, kind: input, shape index: {}]   ;;  %s321_s2 = inlined_call_operand.vmem [shape: f32[1,128], index: 2, kind: input, shape index: {}]   ;;  %s322_s3 = inlined_call_operand.vmem [shape: bf16[128,8], index: 3, kind: input, shape index: {}]   ;;  %s323_s4 = inlined_call_operand.vmem [shape: f32[1,8], index: 4, kind: input, shape index: {}]   ;;  %s324_s5 = inlined_call_operand.hbm [shape: f32[4,8], index: 5, kind: output, shape index: {}]  }
   0x1   :  { %v204_v0 = vld [vmem:[%s320_s1] sm:$0xff]  ;;  %v212_v2 = vld [vmem:[%s322_s3 + $0x38] sm:$0xff]  ;;  %v211_v4 = vld [vmem:[%s322_s3 + $0x30] sm:$0xff] }
   0x2   :  { %v22_v1 = vld [vmem:[%s319_s0] sm:$0xf]  ;;  %47 = vmatpush.bf16.msra.mxu0 %v204_v0  ;;  %124 = vmatpush.bf16.msra.mxu1 %v212_v2 }
   0x3   :  { %v23_v3 = vpack.c.bf16 %v22_v1, %v22_v1 }
   0x4   :  { %10 = vsyncpa [#allocation3], 0  ;;  %v210_v5 = vld [vmem:[%s322_s3 + $0x28] sm:$0xff]  ;;  %v209_v6 = vld [vmem:[%s322_s3 + $0x20] sm:$0xff]  ;;  %vm137_vm1 = vcmask 60416   ;;  %s158_s16 = sshll.u32 %s324_s5, 4  ;;  %s159_s16 = int_to_ptr.hbm [resolvable:$true] %s158_s16 }
   0x5   :  { %171 = vmatmul.msk.bf16.vlgmr.msra.gmra.mxu0 %vm36_vm0, %v23_v3  ;;  %v208_v7 = vld [vmem:[%s322_s3 + $0x18] sm:$0xff]  ;;  %v207_v8 = vld [vmem:[%s322_s3 + $0x10] sm:$0xff]  ;;  %v206_v9 = vld [vmem:[%s322_s3 + $0x8] sm:$0xff] }
   0x6   :  { %125 = vmatpush.bf16.msra.mxu1 %v211_v4  ;;  %v205_v10 = vld [vmem:[%s322_s3] sm:$0xff] }
   0x7   :  { %v214_v11 = vld [vmem:[%s321_s2] ss:$0 sm:$0xff]  ;;  %s246_s2 = smov [#allocation2]  }
   0x8   :  { %v215_v18 = vld [vmem:[%s323_s4] ss:$0 sm:$0xff]  ;;  %s156_s3 = sshll.u32 %s246_s2, 4  ;;  %s157_s3 = int_to_ptr.vmem [resolvable:$true] %s156_s3 }
   0xa   :  { %126 = vmatpush.bf16.msra.mxu1 %v210_v5 }
   0xe   :  { %127 = vmatpush.bf16.msra.mxu1 %v209_v6 }
  0x12   :  { %128 = vmatpush.bf16.msra.mxu1 %v208_v7 }
  0x16   :  { %129 = vmatpush.bf16.msra.mxu1 %v207_v8 }
  0x1a   :  { %130 = vmatpush.bf16.msra.mxu1 %v206_v9 }
  0x1e   :  { %131 = vmatpush.bf16.msra.mxu1 %v205_v10 }
  0x82   :  { %v49_v12 = vpop.f32.mrf.mxu0 }
  0x83   :  { %v50_v13 = vadd.f32 %v214_v11, %v49_v12 }
  0x85   :  { %v53_v14 = vmul.f32 0.01, %v50_v13 }
  0x87   :  { %v54_v15 = vmax.f32 %v50_v13, %v53_v14 }
  0x89   :  { %v55_v16 = vpack.c.bf16 %v54_v15, %v54_v15 }
  0x8a   :  { %v51_v17 = vpop.f32.mrf.mxu0 }
  0x8b   :  { %132 = vmatmul.bf16.vlgmr.msra.gmra.mxu1 %v55_v16 }
 0x108   :  { %v133_v19 = vpop.f32.mrf.mxu1 }
 0x109   :  { %v134_v20 = vadd.f32 %v215_v18, %v133_v19 }
 0x10b   :  { %v138_v21 = vsel %vm137_vm1, %v134_v20, -inf }
 0x10c   :  { %139 = vmax.xlane.f32.xlu0 %v138_v21 }
 0x110   :  { %v135_v22 = vpop.f32.mrf.mxu1 }
 0x17f   :  { %v140_v23 = vpop.xlane.xlu0 %139 }
 0x180   :  { %v141_v24 = vsub.f32 %v134_v20, %v140_v23 }
 0x182   :  { %v142_v25 = vmul.f32 1.442695, %v141_v24 }
 0x184   :  { %216 = vpow2.f32 %v142_v25 }
 0x18a   :  { %v217_v26 = vpop.eup %216 }
 0x18b   :  { %v144_v27 = vsel %vm137_vm1, %v217_v26, 0.0 }
 0x18c   :  { %145 = vadd.xlane.f32.xlu0 %v144_v27 }
 0x1ff   :  { %v146_v28 = vpop.xlane.xlu0 %145 }
 0x200   :  { %218 = vlog2.f32 %v146_v28 }
 0x206   :  { %v219_v29 = vpop.eup %218 }
 0x207   :  { %v148_v30 = vmul.f32 0.6931472, %v219_v29 }
 0x209   :  { %v149_v31 = vsub.f32 %v141_v24, %v148_v30 }
 0x20b   :  { %150 = vst.msk [vmem:[#allocation2] sm:$0xf] %vm137_vm1, %v149_v31 }
 0x20c   :  { %161 = dma.vmem_to_hbm [thread:$0]  %s157_s3, 64, %s159_s16, [#allocation3]  }
 0x20d   :  { %244 = dma.done.wait [#allocation3], 64  }
 0x20e   :  { %245 = vsyncadd [#allocation3], 4294967232 }
 0x20f   :  { %166 = vsyncpa [#allocation3], 1 }

// kernel: tpu_custom_call.1
= control target key start
LH: loop header
LB: loop body
LE: loop exit
PB: predicated region body
PF: predicated region fallthrough
CT: control target
= control target key end

     0   :  { %vm36_vm0 = vcmask 130048   ;;  %s319_s0 = inlined_call_operand.vmem [shape: f32[4,16], index: 0, kind: input, shape index: {}]   ;;  %s320_s1 = inlined_call_operand.vmem [shape: bf16[16,128], index: 1, kind: input, shape index: {}]   ;;  %s321_s2 = inlined_call_operand.vmem [shape: f32[1,128], index: 2, kind: input, shape index: {}]   ;;  %s322_s3 = inlined_call_operand.vmem [shape: bf16[128,8], index: 3, kind: input, shape index: {}]   ;;  %s323_s4 = inlined_call_operand.vmem [shape: f32[1,8], index: 4, kind: input, shape index: {}]   ;;  %s324_s5 = inlined_call_operand.hbm [shape: f32[4,8], index: 5, kind: output, shape index: {}]  }
   0x1   :  { %v204_v0 = vld [vmem:[%s320_s1] sm:$0xff]  ;;  %v212_v2 = vld [vmem:[%s322_s3 + $0x38] sm:$0xff]  ;;  %v211_v4 = vld [vmem:[%s322_s3 + $0x30] sm:$0xff] }
   0x2   :  { %v22_v1 = vld [vmem:[%s319_s0] sm:$0xf]  ;;  %47 = vmatpush.bf16.msra.mxu0 %v204_v0  ;;  %124 = vmatpush.bf16.msra.mxu1 %v212_v2 }
   0x3   :  { %v23_v3 = vpack.c.bf16 %v22_v1, %v22_v1 }
   0x4   :  { %10 = vsyncpa [#allocation3], 0  ;;  %v210_v5 = vld [vmem:[%s322_s3 + $0x28] sm:$0xff]  ;;  %v209_v6 = vld [vmem:[%s322_s3 + $0x20] sm:$0xff]  ;;  %vm137_vm1 = vcmask 60416   ;;  %s158_s16 = sshll.u32 %s324_s5, 4  ;;  %s159_s16 = int_to_ptr.hbm [resolvable:$true] %s158_s16 }
   0x5   :  { %171 = vmatmul.msk.bf16.vlgmr.msra.gmra.mxu0 %vm36_vm0, %v23_v3  ;;  %v208_v7 = vld [vmem:[%s322_s3 + $0x18] sm:$0xff]  ;;  %v207_v8 = vld [vmem:[%s322_s3 + $0x10] sm:$0xff]  ;;  %v206_v9 = vld [vmem:[%s322_s3 + $0x8] sm:$0xff] }
   0x6   :  { %125 = vmatpush.bf16.msra.mxu1 %v211_v4  ;;  %v205_v10 = vld [vmem:[%s322_s3] sm:$0xff] }
   0x7   :  { %v214_v11 = vld [vmem:[%s321_s2] ss:$0 sm:$0xff]  ;;  %s246_s2 = smov [#allocation2]  }
   0x8   :  { %v215_v18 = vld [vmem:[%s323_s4] ss:$0 sm:$0xff]  ;;  %s156_s3 = sshll.u32 %s246_s2, 4  ;;  %s157_s3 = int_to_ptr.vmem [resolvable:$true] %s156_s3 }
   0xa   :  { %126 = vmatpush.bf16.msra.mxu1 %v210_v5 }
   0xe   :  { %127 = vmatpush.bf16.msra.mxu1 %v209_v6 }
  0x12   :  { %128 = vmatpush.bf16.msra.mxu1 %v208_v7 }
  0x16   :  { %129 = vmatpush.bf16.msra.mxu1 %v207_v8 }
  0x1a   :  { %130 = vmatpush.bf16.msra.mxu1 %v206_v9 }
  0x1e   :  { %131 = vmatpush.bf16.msra.mxu1 %v205_v10 }
  0x82   :  { %v49_v12 = vpop.f32.mrf.mxu0 }
  0x83   :  { %v50_v13 = vadd.f32 %v214_v11, %v49_v12 }
  0x85   :  { %v53_v14 = vmul.f32 0.01, %v50_v13 }
  0x87   :  { %v54_v15 = vmax.f32 %v50_v13, %v53_v14 }
  0x89   :  { %v55_v16 = vpack.c.bf16 %v54_v15, %v54_v15 }
  0x8a   :  { %v51_v17 = vpop.f32.mrf.mxu0 }
  0x8b   :  { %132 = vmatmul.bf16.vlgmr.msra.gmra.mxu1 %v55_v16 }
 0x108   :  { %v133_v19 = vpop.f32.mrf.mxu1 }
 0x109   :  { %v134_v20 = vadd.f32 %v215_v18, %v133_v19 }
 0x10b   :  { %v138_v21 = vsel %vm137_vm1, %v134_v20, -inf }
 0x10c   :  { %139 = vmax.xlane.f32.xlu0 %v138_v21 }
 0x110   :  { %v135_v22 = vpop.f32.mrf.mxu1 }
 0x17f   :  { %v140_v23 = vpop.xlane.xlu0 %139 }
 0x180   :  { %v141_v24 = vsub.f32 %v134_v20, %v140_v23 }
 0x182   :  { %v142_v25 = vmul.f32 1.442695, %v141_v24 }
 0x184   :  { %216 = vpow2.f32 %v142_v25 }
 0x18a   :  { %v217_v26 = vpop.eup %216 }
 0x18b   :  { %v144_v27 = vsel %vm137_vm1, %v217_v26, 0.0 }
 0x18c   :  { %145 = vadd.xlane.f32.xlu0 %v144_v27 }
 0x1ff   :  { %v146_v28 = vpop.xlane.xlu0 %145 }
 0x200   :  { %218 = vlog2.f32 %v146_v28 }
 0x206   :  { %v219_v29 = vpop.eup %218 }
 0x207   :  { %v148_v30 = vmul.f32 0.6931472, %v219_v29 }
 0x209   :  { %v149_v31 = vsub.f32 %v141_v24, %v148_v30 }
 0x20b   :  { %150 = vst.msk [vmem:[#allocation2] sm:$0xf] %vm137_vm1, %v149_v31 }
 0x20c   :  { %161 = dma.vmem_to_hbm [thread:$0]  %s157_s3, 64, %s159_s16, [#allocation3]  }
 0x20d   :  { %244 = dma.done.wait [#allocation3], 64  }
 0x20e   :  { %245 = vsyncadd [#allocation3], 4294967232 }
 0x20f   :  { %166 = vsyncpa [#allocation3], 1 }

</bundles_post_ra>
